<compile_context>
chip_gen: v6e
topology: v6e:2x2x1
jax: 0.10.0
libtpu: 0.0.40
codegen_flags: <defaults>
</compile_context>

<pallas_src>
import jax
import jax.numpy as jnp
from jax.experimental import pallas as pl
from jax.experimental.pallas import tpu as pltpu

IN_FEATURES = 11
HIDDEN1 = 64
HIDDEN2 = 64
HIDDEN3 = 16
OUT_FEATURES = 1


def _round_up(x, m):
    return ((x + m - 1) // m) * m


def mlp_kernel(x_ref,
               w1_ref, b1_ref,
               w2_ref, b2_ref,
               w3_ref, b3_ref,
               w4_ref, b4_ref,
               o_ref):
    # x_ref: (11, B_tile) — batch on the lane axis.
    # Each layer: (out, in) @ (in, B_tile) -> (out, B_tile); the (out, 1)
    # bias broadcasts over the lane (batch) axis; ReLU is a full-lane VPU op.
    x = x_ref[...]
    h = jnp.dot(w1_ref[...], x, preferred_element_type=jnp.float32) + b1_ref[...]
    h = jnp.maximum(h, 0.0)
    h = jnp.dot(w2_ref[...], h, preferred_element_type=jnp.float32) + b2_ref[...]
    h = jnp.maximum(h, 0.0)
    h = jnp.dot(w3_ref[...], h, preferred_element_type=jnp.float32) + b3_ref[...]
    h = jnp.maximum(h, 0.0)
    h = jnp.dot(w4_ref[...], h, preferred_element_type=jnp.float32) + b4_ref[...]
    o_ref[...] = h.astype(o_ref.dtype)


def nn_input11_output1_forward(image, params, *, b_tile=1024):
    """image: any shape (B, ...) whose trailing dims flatten to 11 features."""
    b = image.shape[0]
    x = image.reshape(b, -1).astype(jnp.float32)   # mimics image.view(B, -1)
    assert x.shape[1] == IN_FEATURES, "flattened feature size must be 11"

    (w1, b1), (w2, b2), (w3, b3), (w4, b4) = params

    # Batch-on-lanes layout: (11, B), padded so the lane dim tiles by b_tile
    # (b_tile is a multiple of 128 -> unmasked, lane-dense loads/stores).
    bp = _round_up(b, 128)
    if bp <= b_tile:
        b_tile = bp
    else:
        bp = _round_up(b, b_tile)
    xt = jnp.pad(x.T, ((0, 0), (0, bp - b)))        # (11, Bp)

    grid = (bp // b_tile,)

    def col_map(i):
        return (0, i)

    def const_map(i):
        return (0, 0)

    out_t = pl.pallas_call(
        mlp_kernel,
        out_shape=jax.ShapeDtypeStruct((OUT_FEATURES, bp), jnp.float32),
        grid_spec=pltpu.PrefetchScalarGridSpec(
            num_scalar_prefetch=0,
            grid=grid,
            in_specs=[
                pl.BlockSpec((IN_FEATURES, b_tile), col_map),       # x tile
                pl.BlockSpec((HIDDEN1, IN_FEATURES), const_map),    # w1
                pl.BlockSpec((HIDDEN1, 1), const_map),              # b1
                pl.BlockSpec((HIDDEN2, HIDDEN1), const_map),        # w2
                pl.BlockSpec((HIDDEN2, 1), const_map),              # b2
                pl.BlockSpec((HIDDEN3, HIDDEN2), const_map),        # w3
                pl.BlockSpec((HIDDEN3, 1), const_map),              # b3
                pl.BlockSpec((OUT_FEATURES, HIDDEN3), const_map),   # w4
                pl.BlockSpec((OUT_FEATURES, 1), const_map),         # b4
            ],
            out_specs=pl.BlockSpec((OUT_FEATURES, b_tile), col_map),
        ),
        compiler_params=pltpu.CompilerParams(
            dimension_semantics=("parallel",),
        ),
    )(xt, w1, b1, w2, b2, w3, b3, w4, b4)

    # Back to the PyTorch (B, 1) layout, dropping batch padding.
    return out_t[:, :b].T


def init_params(key):
    """Deterministic init mirroring nn.Linear defaults:
    U(-1/sqrt(fan_in), 1/sqrt(fan_in)) for weight and bias.
    Weights kept in PyTorch (out_features, in_features) order;
    biases stored as (out_features, 1) for lane broadcasting."""
    dims = [(IN_FEATURES, HIDDEN1),
            (HIDDEN1, HIDDEN2),
            (HIDDEN2, HIDDEN3),
            (HIDDEN3, OUT_FEATURES)]
    params = []
    for (fan_in, fan_out) in dims:
        key, kw, kb = jax.random.split(key, 3)
        bound = 1.0 / jnp.sqrt(jnp.float32(fan_in))
        w = jax.random.uniform(kw, (fan_out, fan_in), jnp.float32,
                               minval=-bound, maxval=bound)
        bvec = jax.random.uniform(kb, (fan_out, 1), jnp.float32,
                                  minval=-bound, maxval=bound)
        params.append((w, bvec))
    return params


def reference_forward(image, params):
    b = image.shape[0]
    x = image.reshape(b, -1).astype(jnp.float32)
    (w1, b1), (w2, b2), (w3, b3), (w4, b4) = params
    h = jnp.maximum(x @ w1.T + b1.T, 0.0)
    h = jnp.maximum(h @ w2.T + b2.T, 0.0)
    h = jnp.maximum(h @ w3.T + b3.T, 0.0)
    return h @ w4.T + b4.T


if __name__ == "__main__":
    key = jax.random.PRNGKey(0)
    key, kx = jax.random.split(key)

    # batch=8, 11 input features (flatten(image) yields 11 features per row)
    x = jax.random.normal(kx, (8, IN_FEATURES), jnp.float32)

    params = init_params(key)

    out = nn_input11_output1_forward(x, params)
    out = jax.block_until_ready(out)

    ref = reference_forward(x, params)
    assert out.shape == (8, 1)
    assert jnp.allclose(out, ref, atol=1e-5, rtol=1e-5)

    print("KERNEL_OK")
</pallas_src>

<mosaic_0001>
module attributes {stable_mosaic.version = 11 : i64} {
  func.func @mlp_kernel(%arg0: i32, %arg1: memref<11x128xf32, #tpu.memory_space<vmem>>, %arg2: memref<64x11xf32, #tpu.memory_space<vmem>>, %arg3: memref<64x1xf32, #tpu.memory_space<vmem>>, %arg4: memref<64x64xf32, #tpu.memory_space<vmem>>, %arg5: memref<64x1xf32, #tpu.memory_space<vmem>>, %arg6: memref<16x64xf32, #tpu.memory_space<vmem>>, %arg7: memref<16x1xf32, #tpu.memory_space<vmem>>, %arg8: memref<1x16xf32, #tpu.memory_space<vmem>>, %arg9: memref<1x1xf32, #tpu.memory_space<vmem>>, %arg10: memref<1x128xf32, #tpu.memory_space<vmem>>) attributes {dimension_semantics = [#tpu.dimension_semantics<parallel>], iteration_bounds = array<i64: 1>, scalar_prefetch = 0 : i64, scratch_operands = 0 : i64, tpu.core_type = #tpu.core_type<tc>, window_params = [{transform_indices = @transform_0, window_bounds = array<i64: 11, 128>}, {pipeline_mode = #tpu.pipeline_mode<synchronous>, transform_indices = @transform_1, window_bounds = array<i64: 64, 11>}, {pipeline_mode = #tpu.pipeline_mode<synchronous>, transform_indices = @transform_2, window_bounds = array<i64: 64, 1>}, {pipeline_mode = #tpu.pipeline_mode<synchronous>, transform_indices = @transform_3, window_bounds = array<i64: 64, 64>}, {pipeline_mode = #tpu.pipeline_mode<synchronous>, transform_indices = @transform_4, window_bounds = array<i64: 64, 1>}, {pipeline_mode = #tpu.pipeline_mode<synchronous>, transform_indices = @transform_5, window_bounds = array<i64: 16, 64>}, {pipeline_mode = #tpu.pipeline_mode<synchronous>, transform_indices = @transform_6, window_bounds = array<i64: 16, 1>}, {pipeline_mode = #tpu.pipeline_mode<synchronous>, transform_indices = @transform_7, window_bounds = array<i64: 1, 16>}, {pipeline_mode = #tpu.pipeline_mode<synchronous>, transform_indices = @transform_8, window_bounds = array<i64: 1, 1>}, {transform_indices = @transform_9, window_bounds = array<i64: 1, 128>}]} {
    %c0 = arith.constant 0 : index
    %c0_0 = arith.constant 0 : index
    %0 = vector.load %arg1[%c0, %c0_0] : memref<11x128xf32, #tpu.memory_space<vmem>>, vector<11x128xf32>
    %c0_1 = arith.constant 0 : index
    %c0_2 = arith.constant 0 : index
    %1 = vector.load %arg2[%c0_1, %c0_2] : memref<64x11xf32, #tpu.memory_space<vmem>>, vector<64x11xf32>
    %cst = arith.constant dense<0.000000e+00> : vector<64x128xf32>
    %2 = tpu.matmul %1, %0, %cst {dimension_numbers = #tpu.dot_dimension_numbers<[1], [0], [0], [1], [0, 0, 1, 1], [], []>} : vector<64x11xf32>, vector<11x128xf32>, vector<64x128xf32> -> vector<64x128xf32>
    %c0_3 = arith.constant 0 : index
    %c0_4 = arith.constant 0 : index
    %3 = vector.load %arg3[%c0_3, %c0_4] : memref<64x1xf32, #tpu.memory_space<vmem>>, vector<64x1xf32>
    %4 = vector.broadcast %3 : vector<64x1xf32> to vector<64x128xf32>
    %5 = arith.addf %2, %4 : vector<64x128xf32>
    %cst_5 = arith.constant 0.000000e+00 : f32
    %6 = vector.broadcast %cst_5 : f32 to vector<64x128xf32>
    %7 = arith.maximumf %5, %6 : vector<64x128xf32>
    %c0_6 = arith.constant 0 : index
    %c0_7 = arith.constant 0 : index
    %8 = vector.load %arg4[%c0_6, %c0_7] : memref<64x64xf32, #tpu.memory_space<vmem>>, vector<64x64xf32>
    %cst_8 = arith.constant dense<0.000000e+00> : vector<64x128xf32>
    %9 = tpu.matmul %8, %7, %cst_8 {dimension_numbers = #tpu.dot_dimension_numbers<[1], [0], [0], [1], [0, 0, 1, 1], [], []>} : vector<64x64xf32>, vector<64x128xf32>, vector<64x128xf32> -> vector<64x128xf32>
    %c0_9 = arith.constant 0 : index
    %c0_10 = arith.constant 0 : index
    %10 = vector.load %arg5[%c0_9, %c0_10] : memref<64x1xf32, #tpu.memory_space<vmem>>, vector<64x1xf32>
    %11 = vector.broadcast %10 : vector<64x1xf32> to vector<64x128xf32>
    %12 = arith.addf %9, %11 : vector<64x128xf32>
    %cst_11 = arith.constant 0.000000e+00 : f32
    %13 = vector.broadcast %cst_11 : f32 to vector<64x128xf32>
    %14 = arith.maximumf %12, %13 : vector<64x128xf32>
    %c0_12 = arith.constant 0 : index
    %c0_13 = arith.constant 0 : index
    %15 = vector.load %arg6[%c0_12, %c0_13] : memref<16x64xf32, #tpu.memory_space<vmem>>, vector<16x64xf32>
    %cst_14 = arith.constant dense<0.000000e+00> : vector<16x128xf32>
    %16 = tpu.matmul %15, %14, %cst_14 {dimension_numbers = #tpu.dot_dimension_numbers<[1], [0], [0], [1], [0, 0, 1, 1], [], []>} : vector<16x64xf32>, vector<64x128xf32>, vector<16x128xf32> -> vector<16x128xf32>
    %c0_15 = arith.constant 0 : index
    %c0_16 = arith.constant 0 : index
    %17 = vector.load %arg7[%c0_15, %c0_16] : memref<16x1xf32, #tpu.memory_space<vmem>>, vector<16x1xf32>
    %18 = vector.broadcast %17 : vector<16x1xf32> to vector<16x128xf32>
    %19 = arith.addf %16, %18 : vector<16x128xf32>
    %cst_17 = arith.constant 0.000000e+00 : f32
    %20 = vector.broadcast %cst_17 : f32 to vector<16x128xf32>
    %21 = arith.maximumf %19, %20 : vector<16x128xf32>
    %c0_18 = arith.constant 0 : index
    %c0_19 = arith.constant 0 : index
    %22 = vector.load %arg8[%c0_18, %c0_19] : memref<1x16xf32, #tpu.memory_space<vmem>>, vector<1x16xf32>
    %cst_20 = arith.constant dense<0.000000e+00> : vector<1x128xf32>
    %23 = tpu.matmul %22, %21, %cst_20 {dimension_numbers = #tpu.dot_dimension_numbers<[1], [0], [0], [1], [0, 0, 1, 1], [], []>} : vector<1x16xf32>, vector<16x128xf32>, vector<1x128xf32> -> vector<1x128xf32>
    %c0_21 = arith.constant 0 : index
    %c0_22 = arith.constant 0 : index
    %24 = vector.load %arg9[%c0_21, %c0_22] : memref<1x1xf32, #tpu.memory_space<vmem>>, vector<1x1xf32>
    %25 = vector.broadcast %24 : vector<1x1xf32> to vector<1x128xf32>
    %26 = arith.addf %23, %25 : vector<1x128xf32>
    %c0_23 = arith.constant 0 : index
    %c0_24 = arith.constant 0 : index
    %27 = vector.load %arg10[%c0_23, %c0_24] : memref<1x128xf32, #tpu.memory_space<vmem>>, vector<1x128xf32>
    tpu.vector_store %arg10[%c0_23, %c0_24], %26 {strides = array<i32>} : memref<1x128xf32, #tpu.memory_space<vmem>>, vector<1x128xf32>,
    return
  }
  func.func @transform_0(%arg0: i32) -> (i32, i32) {
    %c0_i32 = arith.constant 0 : i32
    %c0_i32_0 = arith.constant 0 : i32
    return %c0_i32, %arg0 : i32, i32
  }
  func.func @transform_1(%arg0: i32) -> (i32, i32) {
    %c0_i32 = arith.constant 0 : i32
    %c0_i32_0 = arith.constant 0 : i32
    %c0_i32_1 = arith.constant 0 : i32
    return %c0_i32, %c0_i32_0 : i32, i32
  }
  func.func @transform_2(%arg0: i32) -> (i32, i32) {
    %c0_i32 = arith.constant 0 : i32
    %c0_i32_0 = arith.constant 0 : i32
    %c0_i32_1 = arith.constant 0 : i32
    return %c0_i32, %c0_i32_0 : i32, i32
  }
  func.func @transform_3(%arg0: i32) -> (i32, i32) {
    %c0_i32 = arith.constant 0 : i32
    %c0_i32_0 = arith.constant 0 : i32
    %c0_i32_1 = arith.constant 0 : i32
    return %c0_i32, %c0_i32_0 : i32, i32
  }
  func.func @transform_4(%arg0: i32) -> (i32, i32) {
    %c0_i32 = arith.constant 0 : i32
    %c0_i32_0 = arith.constant 0 : i32
    %c0_i32_1 = arith.constant 0 : i32
    return %c0_i32, %c0_i32_0 : i32, i32
  }
  func.func @transform_5(%arg0: i32) -> (i32, i32) {
    %c0_i32 = arith.constant 0 : i32
    %c0_i32_0 = arith.constant 0 : i32
    %c0_i32_1 = arith.constant 0 : i32
    return %c0_i32, %c0_i32_0 : i32, i32
  }
  func.func @transform_6(%arg0: i32) -> (i32, i32) {
    %c0_i32 = arith.constant 0 : i32
    %c0_i32_0 = arith.constant 0 : i32
    %c0_i32_1 = arith.constant 0 : i32
    return %c0_i32, %c0_i32_0 : i32, i32
  }
  func.func @transform_7(%arg0: i32) -> (i32, i32) {
    %c0_i32 = arith.constant 0 : i32
    %c0_i32_0 = arith.constant 0 : i32
    %c0_i32_1 = arith.constant 0 : i32
    return %c0_i32, %c0_i32_0 : i32, i32
  }
  func.func @transform_8(%arg0: i32) -> (i32, i32) {
    %c0_i32 = arith.constant 0 : i32
    %c0_i32_0 = arith.constant 0 : i32
    %c0_i32_1 = arith.constant 0 : i32
    return %c0_i32, %c0_i32_0 : i32, i32
  }
  func.func @transform_9(%arg0: i32) -> (i32, i32) {
    %c0_i32 = arith.constant 0 : i32
    %c0_i32_0 = arith.constant 0 : i32
    return %c0_i32, %arg0 : i32, i32
  }
}

</mosaic_0001>

<bundles_post_ra>
// kernel: tpu_custom_call.1
= control target key start
LH: loop header
LB: loop body
LE: loop exit
PB: predicated region body
PF: predicated region fallthrough
CT: control target
= control target key end

     0   :  { %s978_s0 = inlined_call_operand.vmem [shape: f32[11,128], index: 0, kind: input, shape index: {}]   ;;  %s979_s1 = inlined_call_operand.vmem [shape: f32[64,11], index: 1, kind: input, shape index: {}]   ;;  %s980_s2 = inlined_call_operand.vmem [shape: f32[64,1], index: 2, kind: input, shape index: {}]   ;;  %s981_s3 = inlined_call_operand.vmem [shape: f32[64,64], index: 3, kind: input, shape index: {}]   ;;  %s982_s4 = inlined_call_operand.vmem [shape: f32[64,1], index: 4, kind: input, shape index: {}]   ;;  %s983_s5 = inlined_call_operand.vmem [shape: f32[16,64], index: 5, kind: input, shape index: {}]   ;;  %s984_s6 = inlined_call_operand.vmem [shape: f32[16,1], index: 6, kind: input, shape index: {}]   ;;  %s985_s7 = inlined_call_operand.vmem [shape: f32[1,16], index: 7, kind: input, shape index: {}]   ;;  %s986_s8 = inlined_call_operand.<no memory space> [shape: f32[1,1], index: 8, kind: input, shape index: {}]   ;;  %s987_s9 = inlined_call_operand.hbm [shape: f32[1,128], index: 9, kind: output, shape index: {}]  }
   0x1   :  { %v14_v0 = vstv %s986_s8 }
   0x2   :  { %15 = vst [vmem:[#allocation2] sm:$0x1] %v14_v0 }
   0x3   :  { %v36_v1 = vld [vmem:[%s978_s0 + $0x8] sm:$0x7]  ;;  %vm118_vm0 = vcmask 1042432   ;;  %v35_v2 = vld [vmem:[%s978_s0] sm:$0xff]  ;;  %vm93_vm1 = vcmask 89088   ;;  %v783_v5 = vmov 0  }
   0x4   :  { %v37_v3 = vld [vmem:[%s979_s1] sm:$0xff]  ;;  %685 = vmatprep.subr.msk.mxu0 %vm118_vm0, %v36_v1  ;;  %v38_v4 = vld [vmem:[%s979_s1 + $0x8] sm:$0xff]  ;;  %759 = vset.pattern.permute.xlu0 %v783_v5  ;;  %v39_v6 = vld [vmem:[%s979_s1 + $0x10] sm:$0xff] }
   0x5   :  { %689 = vmatprep.mubr.msk.f32.mxu0 %vm93_vm1, %v37_v3  ;;  %686 = vmatpush3.msk.msra.mxu0 %vm118_vm0, %v36_v1  ;;  %v52_v7 = vld [vmem:[%s980_s2 + $0x38] sm:$0xff]  ;;  %v50_v8 = vld [vmem:[%s980_s2 + $0x28] sm:$0xff]  ;;  %v51_v9 = vld [vmem:[%s980_s2 + $0x30] sm:$0xff] }
   0x6   :  { %687 = vmatprep.subr.mxu0 %v35_v2  ;;  %760 = vset.pattern.permute.xlu1 %v783_v5  ;;  %v40_v10 = vld [vmem:[%s979_s1 + $0x18] sm:$0xff]  ;;  %v49_v11 = vld [vmem:[%s980_s2 + $0x20] sm:$0xff] }
   0x7   :  { %688 = vmatpush3.msra.mxu0 %v35_v2  ;;  %90 = vperm.xlu0 %759, %v52_v7   ;;  %v41_v12 = vld [vmem:[%s979_s1 + $0x20] sm:$0xff]  ;;  %v48_v13 = vld [vmem:[%s980_s2 + $0x18] sm:$0xff] }
   0x8   :  { %690 = vmatmul.mubr.msk.f32.vlgmr.msra.gmra.mxu0 %vm93_vm1, %v38_v4  ;;  %80 = vperm.xlu1 %760, %v50_v8  }
   0x9   :  { %692 = vmatprep.mubr.msk.f32.mxu0 %vm93_vm1, %v39_v6 }
   0xb   :  { %85 = vperm.xlu0 %759, %v51_v9  }
   0xc   :  { %693 = vmatmul.mubr.msk.f32.gmra.mxu0 %vm93_vm1, %v40_v10  ;;  %75 = vperm.xlu1 %760, %v49_v11  }
   0xd   :  { %16 = vsyncpa [#allocation4], 0  ;;  %695 = vmatprep.mubr.msk.f32.mxu0 %vm93_vm1, %v41_v12  ;;  %v42_v14 = vld [vmem:[%s979_s1 + $0x28] sm:$0xff]  ;;  %v47_v15 = vld [vmem:[%s980_s2 + $0x10] sm:$0xff]  ;;  %vm291_vm2 = vcmask 523264   ;;  %vm785_vm3 = vmmov 0  }
   0xe   :  { %v43_v16 = vld [vmem:[%s979_s1 + $0x30] sm:$0xff]  ;;  %v46_v17 = vld [vmem:[%s980_s2 + $0x8] sm:$0xff]  ;;  %v44_v18 = vld [vmem:[%s979_s1 + $0x38] sm:$0xff]  ;;  %vm537_vm4 = vcmask 130048  }
   0xf   :  { %70 = vperm.xlu0 %759, %v48_v13   ;;  %v45_v19 = vld [vmem:[%s980_s2] sm:$0xff]  ;;  %v250_v20 = vld [vmem:[%s982_s4 + $0x38] sm:$0xff]  ;;  %v249_v21 = vld [vmem:[%s982_s4 + $0x30] sm:$0xff] }
  0x10   :  { %696 = vmatmul.mubr.msk.f32.gmra.mxu0 %vm93_vm1, %v42_v14  ;;  %65 = vperm.xlu1 %760, %v47_v15   ;;  %v248_v22 = vld [vmem:[%s982_s4 + $0x28] sm:$0xff]  ;;  %v247_v23 = vld [vmem:[%s982_s4 + $0x20] sm:$0xff]  ;;  %v246_v24 = vld [vmem:[%s982_s4 + $0x18] sm:$0xff] }
  0x11   :  { %698 = vmatprep.mubr.msk.f32.mxu0 %vm93_vm1, %v43_v16  ;;  %v245_v25 = vld [vmem:[%s982_s4 + $0x10] sm:$0xff]  ;;  %v244_v26 = vld [vmem:[%s982_s4 + $0x8] sm:$0xff]  ;;  %v243_v27 = vld [vmem:[%s982_s4] sm:$0xff] }
  0x12   :  { %v432_v28 = vld [vmem:[%s984_s6 + $0x8] sm:$0xff]  ;;  %v431_v29 = vld [vmem:[%s984_s6] sm:$0xff]  ;;  %v237_v1 = vld [vmem:[%s981_s3 + $0x10] sm:$0xff] }
  0x13   :  { %60 = vperm.xlu0 %759, %v46_v17   ;;  %v527_v30 = vld [vmem:[#allocation2] sm:$0x1]  ;;  %v236_v0 = vld [vmem:[%s981_s3 + $0x8] sm:$0xff]  ;;  %v238_v2 = vld [vmem:[%s981_s3 + $0x18] sm:$0xff] }
  0x14   :  { %699 = vmatmul.mubr.msk.f32.gmra.mxu0 %vm93_vm1, %v44_v18  ;;  %55 = vperm.xlu1 %760, %v45_v19   ;;  %v235_v31 = vld [vmem:[%s981_s3] sm:$0xff]  ;;  %v240_v4 = vld [vmem:[%s981_s3 + $0x28] sm:$0xff]  ;;  %v241_v5 = vld [vmem:[%s981_s3 + $0x30] sm:$0xff] }
  0x15   :  { %717 = vmatprep.mubr.msk.f32.mxu1 %vm291_vm2, %v235_v31  ;;  %v239_v3 = vld [vmem:[%s981_s3 + $0x20] sm:$0xff]  ;;  %v242_v6 = vld [vmem:[%s981_s3 + $0x38] sm:$0xff] }
  0x16   :  { %v429_v7 = vld [vmem:[%s983_s5] sm:$0xff] }
  0x17   :  { %288 = vperm.xlu0 %759, %v250_v20   ;;  %745 = vmatprep.mubr.msk.f32.mxu0 %vm291_vm2, %v429_v7 }
  0x18   :  { %283 = vperm.xlu1 %760, %v249_v21  }
  0x1b   :  { %278 = vperm.xlu0 %759, %v248_v22  }
  0x1c   :  { %273 = vperm.xlu1 %760, %v247_v23  }
  0x1f   :  { %268 = vperm.xlu0 %759, %v246_v24  }
  0x20   :  { %263 = vperm.xlu1 %760, %v245_v25  }
  0x23   :  { %258 = vperm.xlu0 %759, %v244_v26  }
  0x24   :  { %253 = vperm.xlu1 %760, %v243_v27  }
  0x27   :  { %440 = vperm.xlu0 %759, %v432_v28  }
  0x28   :  { %435 = vperm.xlu1 %760, %v431_v29  }
  0x2b   :  { %530 = vperm.xlu0 %759, %v527_v30  }
  0x82   :  { %v91_v34 = vpop.permute.xlu0 %90 }
  0x83   :  { %v81_v36 = vpop.permute.xlu1 %80 }
  0x86   :  { %v86_v39 = vpop.permute.xlu0 %85 }
  0x87   :  { %v76_v41 = vpop.permute.xlu1 %75 }
  0x8a   :  { %v71_v48 = vpop.permute.xlu0 %70 }
  0x8b   :  { %v66_v51 = vpop.permute.xlu1 %65 }
  0x8e   :  { %v61_v56 = vpop.permute.xlu0 %60 }
  0x8f   :  { %v56_v59 = vpop.permute.xlu1 %55 }
  0x92   :  { %v289_v10 = vpop.permute.xlu0 %288 }
  0x93   :  { %v284_v12 = vpop.permute.xlu1 %283 }
  0x96   :  { %v279_v15 = vpop.permute.xlu0 %278 }
  0x97   :  { %v274_v17 = vpop.permute.xlu1 %273 }
  0x9a   :  { %v269_v24 = vpop.permute.xlu0 %268 }
  0x9b   :  { %v264_v27 = vpop.permute.xlu1 %263 }
  0xc8   :  { %v691_v32 = vpop.f32.mrf.mxu0 }
  0xc9   :  { %v194_v57 = vadd.f32 %v691_v32, %v61_v56  ;;  %v259_v32 = vpop.permute.xlu0 %258 }
  0xca   :  { %v188_v33 = vpop.f32.mrf.mxu0 }
  0xcb   :  { %v189_v60 = vadd.f32 %v188_v33, %v56_v59  ;;  %v228_v62 = vmax.f32 %v194_v57, 0.0 }
  0xcc   :  { %v694_v35 = vpop.f32.mrf.mxu0 }
  0xcd   :  { %v204_v52 = vadd.f32 %v694_v35, %v71_v48  ;;  %v227_v63 = vmax.f32 %v189_v60, 0.0  ;;  %v254_v35 = vpop.permute.xlu1 %253 }
  0xce   :  { %v198_v37 = vpop.f32.mrf.mxu0 }
  0xcf   :  { %v199_v54 = vadd.f32 %v198_v37, %v66_v51  ;;  %v230_v58 = vmax.f32 %v204_v52, 0.0  ;;  %v533_v51 = vlaneseq }
  0xd0   :  { %v697_v38 = vpop.f32.mrf.mxu0 }
  0xd1   :  { %v214_v45 = vadd.f32 %v697_v38, %v81_v36  ;;  %v229_v61 = vmax.f32 %v199_v54, 0.0  ;;  %v534_v52 = vshrl.u32 %v533_v51, 7 }
  0xd2   :  { %v208_v40 = vpop.f32.mrf.mxu0 }
  0xd3   :  { %v209_v49 = vadd.f32 %v208_v40, %v76_v41  ;;  %v232_v53 = vmax.f32 %v214_v45, 0.0  ;;  %v430_v40 = vld [vmem:[%s983_s5 + $0x8] sm:$0xff]  ;;  %v784_v41 = vmov 0.0   ;;  %v436_v45 = vpop.permute.xlu1 %435  ;;  %s786_s5 = smov [#allocation3]  }
  0xd4   :  { %v700_v42 = vpop.f32.mrf.mxu0  ;;  %s618_s13 = sshll.u32 %s786_s5, 4  ;;  %s619_s13 = int_to_ptr.vmem [resolvable:$true] %s618_s13 }
  0xd5   :  { %v224_v43 = vadd.f32 %v700_v42, %v91_v34  ;;  %v231_v55 = vmax.f32 %v209_v49, 0.0  ;;  %v441_v42 = vpop.permute.xlu0 %440  ;;  %s761_s14 = scalar_lea.vmem %s619_s13, 16  ;;  %s765_s15 = scalar_lea.vmem %s619_s13, 32 }
  0xd6   :  { %v218_v44 = vpop.f32.mrf.mxu0  ;;  %p762_p0 = scmp.ne.s32.totalorder %s619_s13, %s761_s14  ;;  %p766_p1 = scmp.lt.s32.totalorder %s619_s13, %s619_s13 }
  0xd7   :  { %v234_v46 = vmax.f32 %v224_v43, 0.0  ;;  %v219_v47 = vadd.f32 %v218_v44, %v86_v39  ;;  %p767_p2 = scmp.lt.s32.totalorder %s765_s15, %s761_s14 }
  0xd9   :  { %v233_v50 = vmax.f32 %v219_v47, 0.0  ;;  %701 = vmatprep.subr.mxu1 %v234_v46  ;;  %v531_v54 = vpop.permute.xlu0 %530  ;;  %p768_p3 = por %p767_p2, %p766_p1 }
  0xda   :  { %702 = vmatpush3.msra.mxu1 %v234_v46 }
  0xdb   :  { %703 = vmatprep.subr.mxu1 %v233_v50  ;;  %p769_p4 = pnand %p768_p3, %p762_p0 }
  0xdc   :  { %704 = vmatpush3.msra.mxu1 %v233_v50  ;;  %v526_v50 = vld [vmem:[%s985_s7] sm:$0x1] }
  0xdd   :  { %705 = vmatprep.subr.mxu1 %v232_v53 }
  0xde   :  { %706 = vmatpush3.msra.mxu1 %v232_v53  ;;  %v535_v53 = vsub.s32 0, %v534_v52 }
  0xdf   :  { %707 = vmatprep.subr.mxu1 %v231_v55 }
  0xe0   :  { %708 = vmatpush3.msra.mxu1 %v231_v55  ;;  %v536_v55 = vrot.slane %v531_v54, %v535_v53 }
  0xe1   :  { %709 = vmatprep.subr.mxu1 %v230_v58 }
  0xe2   :  { %710 = vmatpush3.msra.mxu1 %v230_v58 }
  0xe3   :  { %711 = vmatprep.subr.mxu1 %v229_v61 }
  0xe4   :  { %712 = vmatpush3.msra.mxu1 %v229_v61 }
  0xe5   :  { %713 = vmatprep.subr.mxu1 %v228_v62 }
  0xe6   :  { %714 = vmatpush3.msra.mxu1 %v228_v62 }
  0xe7   :  { %715 = vmatprep.subr.mxu1 %v227_v63 }
  0xe8   :  { %716 = vmatpush3.msra.mxu1 %v227_v63 }
  0xe9   :  { %718 = vmatmul.mubr.msk.f32.vlgmr.msra.gmra.mxu1 %vm291_vm2, %v236_v0 }
  0xea   :  { %720 = vmatprep.mubr.msk.f32.mxu1 %vm291_vm2, %v237_v1 }
  0xed   :  { %721 = vmatmul.mubr.msk.f32.gmra.mxu1 %vm291_vm2, %v238_v2 }
  0xee   :  { %723 = vmatprep.mubr.msk.f32.mxu1 %vm291_vm2, %v239_v3 }
  0xf1   :  { %724 = vmatmul.mubr.msk.f32.gmra.mxu1 %vm291_vm2, %v240_v4 }
  0xf2   :  { %726 = vmatprep.mubr.msk.f32.mxu1 %vm291_vm2, %v241_v5 }
  0xf5   :  { %727 = vmatmul.mubr.msk.f32.gmra.mxu1 %vm291_vm2, %v242_v6 }
 0x1a9   :  { %v719_v8 = vpop.f32.mrf.mxu1 }
 0x1aa   :  { %v388_v33 = vadd.f32 %v719_v8, %v259_v32 }
 0x1ab   :  { %v382_v9 = vpop.f32.mrf.mxu1 }
 0x1ac   :  { %v383_v36 = vadd.f32 %v382_v9, %v254_v35  ;;  %v422_v38 = vmax.f32 %v388_v33, 0.0 }
 0x1ad   :  { %v722_v11 = vpop.f32.mrf.mxu1 }
 0x1ae   :  { %v398_v28 = vadd.f32 %v722_v11, %v269_v24  ;;  %v421_v39 = vmax.f32 %v383_v36, 0.0 }
 0x1af   :  { %v392_v13 = vpop.f32.mrf.mxu1 }
 0x1b0   :  { %v393_v30 = vadd.f32 %v392_v13, %v264_v27  ;;  %v424_v34 = vmax.f32 %v398_v28, 0.0 }
 0x1b1   :  { %v725_v14 = vpop.f32.mrf.mxu1 }
 0x1b2   :  { %v408_v21 = vadd.f32 %v725_v14, %v279_v15  ;;  %v423_v37 = vmax.f32 %v393_v30, 0.0 }
 0x1b3   :  { %v402_v16 = vpop.f32.mrf.mxu1 }
 0x1b4   :  { %v403_v25 = vadd.f32 %v402_v16, %v274_v17  ;;  %v426_v29 = vmax.f32 %v408_v21, 0.0 }
 0x1b5   :  { %v728_v18 = vpop.f32.mrf.mxu1 }
 0x1b6   :  { %v418_v19 = vadd.f32 %v728_v18, %v289_v10  ;;  %v425_v31 = vmax.f32 %v403_v25, 0.0 }
 0x1b7   :  { %v412_v20 = vpop.f32.mrf.mxu1 }
 0x1b8   :  { %v428_v22 = vmax.f32 %v418_v19, 0.0  ;;  %v413_v23 = vadd.f32 %v412_v20, %v284_v12 }
 0x1ba   :  { %v427_v26 = vmax.f32 %v413_v23, 0.0  ;;  %729 = vmatprep.subr.mxu0 %v428_v22 }
 0x1bb   :  { %730 = vmatpush3.msra.mxu0 %v428_v22 }
 0x1bc   :  { %731 = vmatprep.subr.mxu0 %v427_v26 }
 0x1bd   :  { %732 = vmatpush3.msra.mxu0 %v427_v26 }
 0x1be   :  { %733 = vmatprep.subr.mxu0 %v426_v29 }
 0x1bf   :  { %734 = vmatpush3.msra.mxu0 %v426_v29 }
 0x1c0   :  { %735 = vmatprep.subr.mxu0 %v425_v31 }
 0x1c1   :  { %736 = vmatpush3.msra.mxu0 %v425_v31 }
 0x1c2   :  { %737 = vmatprep.subr.mxu0 %v424_v34 }
 0x1c3   :  { %738 = vmatpush3.msra.mxu0 %v424_v34 }
 0x1c4   :  { %739 = vmatprep.subr.mxu0 %v423_v37 }
 0x1c5   :  { %740 = vmatpush3.msra.mxu0 %v423_v37 }
 0x1c6   :  { %741 = vmatprep.subr.mxu0 %v422_v38 }
 0x1c7   :  { %742 = vmatpush3.msra.mxu0 %v422_v38 }
 0x1c8   :  { %743 = vmatprep.subr.mxu0 %v421_v39 }
 0x1c9   :  { %744 = vmatpush3.msra.mxu0 %v421_v39 }
 0x1ca   :  { %746 = vmatmul.mubr.msk.f32.vlgmr.msra.gmra.mxu0 %vm291_vm2, %v430_v40  ;;  %748 = vmatprep.subr.mxu0 %v784_v41 }
 0x1cb   :  { %752 = vmatprep.mubr.msk.f32.mxu0 %vm785_vm3, %v784_v41 }
 0x28a   :  { %v747_v43 = vpop.f32.mrf.mxu0 }
 0x28b   :  { %v521_v44 = vadd.f32 %v747_v43, %v441_v42 }
 0x28c   :  { %v515_v46 = vpop.f32.mrf.mxu0 }
 0x28d   :  { %v525_v47 = vmax.f32 %v521_v44, 0.0  ;;  %v516_v48 = vadd.f32 %v515_v46, %v436_v45 }
 0x28f   :  { %v524_v49 = vmax.f32 %v516_v48, 0.0  ;;  %749 = vmatpush3.msra.mxu0 %v525_v47 }
 0x290   :  { %750 = vmatprep.subr.mxu0 %v784_v41 }
 0x291   :  { %751 = vmatpush3.msra.mxu0 %v524_v49 }
 0x292   :  { %753 = vmatmul.mubr.msk.f32.vlgmr.msra.gmra.mxu0 %vm537_vm4, %v526_v50 }
 0x352   :  { %v607_v56 = vpop.f32.mrf.mxu0 }
 0x353   :  { %v608_v57 = vadd.f32 %v607_v56, %v536_v55 }
 0x354   :  { %v754_v58 = vpop.f32.mrf.mxu0 }
 0x355   :  { %611 = vst [vmem:[#allocation3] sm:$0x1] %v608_v57 }
 0x356   :  { %772 = shalt.err (!%p769_p4)
}
 0x357   :  { %621 = dma.vmem_to_hbm [thread:$0]  %s619_s13, 16, %s987_s9, [#allocation4]  }
 0x358   :  { %781 = dma.done.wait [#allocation4], 16  }
 0x359   :  { %782 = vsyncadd [#allocation4], 4294967280 }
 0x35a   :  { %625 = vsyncpa [#allocation4], 1 }

</bundles_post_ra>
